<compile_context>
chip_gen: v5e
topology: v5e:2x2
jax: 0.10.0
libtpu: 0.0.40
codegen_flags: <defaults>
</compile_context>

<pallas_src>
import functools

import jax
import jax.numpy as jnp
import numpy as np
from jax import lax
from jax.experimental import pallas as pl
from jax.experimental.pallas import tpu as pltpu


def tri_number(x: int) -> int:
    # == `factorial(x)` in the reference code: 0 + 1 + ... + x = x*(x+1)/2
    return sum(i for i in range(x + 1))


def _diag_flat_indices(d: int) -> np.ndarray:
    # Flat position of element (i, i) in row-major np.tril_indices ordering.
    return np.array([i * (i + 3) // 2 for i in range(d)], dtype=np.int32)


def _local_col(col: jax.Array, d: int) -> jax.Array:
    # Column index within each d-wide matrix slot; cheap bit-and for power-of-two d.
    if d & (d - 1) == 0:
        return jnp.bitwise_and(col, d - 1)
    return col % d


# ---------------------------------------------------------------------------
# Single-matrix kernel (the module's literal forward). Correctness/reference
# path only: an (d, d)=(8, 8) output cannot amortize pallas_call + DMA cost.
# ---------------------------------------------------------------------------
def _symmetric_single_kernel(diag_ref, o_ref):
    # diag_ref: (1, d) f32 — the d diagonal params of L;  o_ref: (d, d) f32.
    d = o_ref.shape[0]
    vals_sq = diag_ref[...] * diag_ref[...]
    row = lax.broadcasted_iota(jnp.int32, (d, d), 0)
    col = lax.broadcasted_iota(jnp.int32, (d, d), 1)
    o_ref[...] = jnp.where(row == col, jnp.broadcast_to(vals_sq, (d, d)), 0.0)


@functools.partial(jax.jit, static_argnames=("dimension",))
def symmetric_parameter_forward(explicit_p: jax.Array, dimension: int) -> jax.Array:
    """SymmetricParameter.forward() with constant_parameter=True. Returns (d, d)."""
    n = tri_number(dimension)
    assert explicit_p.shape == (n, 1)
    p = explicit_p.reshape(n).astype(jnp.float32)
    # One-time gather of the diagonal params of L (the only entries that survive L * L.T).
    diag = p[jnp.asarray(_diag_flat_indices(dimension))].reshape(1, dimension)
    return pl.pallas_call(
        _symmetric_single_kernel,
        out_shape=jax.ShapeDtypeStruct((dimension, dimension), jnp.float32),
        in_specs=[pl.BlockSpec(memory_space=pltpu.MemorySpace.VMEM)],
        out_specs=pl.BlockSpec(memory_space=pltpu.MemorySpace.VMEM),
    )(diag)


# ---------------------------------------------------------------------------
# Batched variant: many independent SymmetricParameter forwards per pallas_call.
# Output laid out lane-dense as (d, B*d): matrix b occupies columns [b*d, (b+1)*d).
# Each grid step writes an unmasked (d, batch_tile*d) block (multiple of 128 lanes).
# ---------------------------------------------------------------------------
def _symmetric_batched_matrix_kernel(diag_ref, o_ref):
    # diag_ref: (1, lanes) f32, column b*d+i holds L_b[i, i];  o_ref: (d, lanes) f32.
    d = o_ref.shape[0]
    lanes = o_ref.shape[1]
    vals_sq = diag_ref[...] * diag_ref[...]                      # 1 vmul
    row = lax.broadcasted_iota(jnp.int32, (d, lanes), 0)
    col = lax.broadcasted_iota(jnp.int32, (d, lanes), 1)
    mask = row == _local_col(col, d)                             # iota + and/cmp
    o_ref[...] = jnp.where(mask, jnp.broadcast_to(vals_sq, (d, lanes)), 0.0)


def _symmetric_batched_diag_kernel(diag_ref, o_ref):
    # diag-only output: just the squared diagonal params, (1, lanes).
    v = diag_ref[...]
    o_ref[...] = v * v


def _lane_dense_diag(explicit_p_batch: jax.Array, dimension: int) -> jax.Array:
    # One-time lane-dense re-layout of the tiny parameter array (it is a Parameter
    # reused every step): gather the d diagonal entries per matrix -> (1, B*d).
    B = explicit_p_batch.shape[0]
    diag_idx = jnp.asarray(_diag_flat_indices(dimension))
    return explicit_p_batch.astype(jnp.float32)[:, diag_idx].reshape(1, B * dimension)


def _check_batched_shapes(B: int, n: int, shape, dimension: int, batch_tile: int) -> int:
    assert shape == (B, n), f"expected (B, {n}) parameters, got {shape}"
    assert B % batch_tile == 0, "B must be a multiple of batch_tile"
    lanes = batch_tile * dimension
    assert lanes % 128 == 0, (
        "batch_tile * dimension must be a multiple of 128 for unmasked lane-dense stores")
    return lanes


@functools.partial(jax.jit, static_argnames=("dimension", "batch_tile"))
def symmetric_parameter_forward_batched(explicit_p_batch: jax.Array,
                                        dimension: int,
                                        batch_tile: int = 256) -> jax.Array:
    """B independent constant-parameter forwards.

    Returns a lane-dense (d, B*d) slab; matrix b is in columns [b*d, (b+1)*d)."""
    n = tri_number(dimension)
    B = explicit_p_batch.shape[0]
    lanes = _check_batched_shapes(B, n, explicit_p_batch.shape, dimension, batch_tile)
    diag = _lane_dense_diag(explicit_p_batch, dimension)
    # NOTE: keep B // batch_tile >= 2 in hot loops so the "parallel" axis can be split
    # across v7x's two TensorCores. VMEM use per step is tiny (<< 1 MiB double-buffered).
    return pl.pallas_call(
        _symmetric_batched_matrix_kernel,
        out_shape=jax.ShapeDtypeStruct((dimension, B * dimension), jnp.float32),
        grid=(B // batch_tile,),
        in_specs=[pl.BlockSpec((1, lanes), lambda g: (0, g))],
        out_specs=pl.BlockSpec((dimension, lanes), lambda g: (0, g)),
        compiler_params=pltpu.CompilerParams(dimension_semantics=("parallel",)),
    )(diag)


@functools.partial(jax.jit, static_argnames=("dimension", "batch_tile"))
def symmetric_parameter_diag_batched(explicit_p_batch: jax.Array,
                                     dimension: int,
                                     batch_tile: int = 256) -> jax.Array:
    """Squared-diagonal-only variant (the output matrix is diagonal by construction).

    Writes d x fewer HBM bytes; consumers expand/fuse diag() themselves. Returns (B, d)."""
    n = tri_number(dimension)
    B = explicit_p_batch.shape[0]
    lanes = _check_batched_shapes(B, n, explicit_p_batch.shape, dimension, batch_tile)
    diag = _lane_dense_diag(explicit_p_batch, dimension)
    out = pl.pallas_call(
        _symmetric_batched_diag_kernel,
        out_shape=jax.ShapeDtypeStruct((1, B * dimension), jnp.float32),
        grid=(B // batch_tile,),
        in_specs=[pl.BlockSpec((1, lanes), lambda g: (0, g))],
        out_specs=pl.BlockSpec((1, lanes), lambda g: (0, g)),
        compiler_params=pltpu.CompilerParams(dimension_semantics=("parallel",)),
    )(diag)
    return out.reshape(B, dimension)


# ---------------------------------------------------------------------------
# Pure-numpy references of the intended semantics, for validation.
# ---------------------------------------------------------------------------
def _reference_single(p_flat: np.ndarray, d: int) -> np.ndarray:
    rows, cols = np.tril_indices(d)
    L = np.zeros((d, d), np.float32)
    L[rows, cols] = p_flat
    return L * L.T


def _reference_batched(p_batch: np.ndarray, d: int) -> np.ndarray:
    B = p_batch.shape[0]
    rows, cols = np.tril_indices(d)
    L = np.zeros((B, d, d), np.float32)
    L[:, rows, cols] = p_batch
    return L * np.transpose(L, (0, 2, 1))


if __name__ == "__main__":
    dimension = 8                        # small square symmetric matrix parameter
    n_params = tri_number(dimension)     # 36

    key = jax.random.PRNGKey(0)
    k1, k2 = jax.random.split(key)

    # --- single forward (mirrors nn.Parameter(th.rand((num_parameters, 1)))) ---
    explicit_p = jax.random.uniform(k1, (n_params, 1), dtype=jnp.float32)
    out = symmetric_parameter_forward(explicit_p, dimension=dimension)
    out = jax.block_until_ready(out)
    assert out.shape == (dimension, dimension) and out.dtype == jnp.float32
    np.testing.assert_allclose(
        np.asarray(out),
        _reference_single(np.asarray(explicit_p).reshape(-1), dimension),
        rtol=1e-6, atol=1e-6)

    # --- batched, lane-dense: 512 forwards, 2 grid steps of (8, 2048) unmasked blocks ---
    B, batch_tile = 512, 256
    p_batch = jax.random.uniform(k2, (B, n_params), dtype=jnp.float32)
    out_wide = symmetric_parameter_forward_batched(
        p_batch, dimension=dimension, batch_tile=batch_tile)
    out_wide = jax.block_until_ready(out_wide)
    assert out_wide.shape == (dimension, B * dimension)

    ref_b = _reference_batched(np.asarray(p_batch), dimension)            # (B, d, d)
    got_b = np.asarray(out_wide).reshape(dimension, B, dimension).transpose(1, 0, 2)
    np.testing.assert_allclose(got_b, ref_b, rtol=1e-6, atol=1e-6)

    # --- diag-only variant (d x less HBM writeback) ---
    diag_sq = symmetric_parameter_diag_batched(
        p_batch, dimension=dimension, batch_tile=batch_tile)
    diag_sq = jax.block_until_ready(diag_sq)
    assert diag_sq.shape == (B, dimension)
    np.testing.assert_allclose(
        np.asarray(diag_sq), np.diagonal(ref_b, axis1=1, axis2=2), rtol=1e-6, atol=1e-6)

    print("KERNEL_OK")
</pallas_src>

<mosaic_0001>
module attributes {stable_mosaic.version = 11 : i64} {
  func.func @_symmetric_single_kernel(%arg0: memref<1x8xf32, #tpu.memory_space<vmem>>, %arg1: memref<8x8xf32, #tpu.memory_space<vmem>>) attributes {dimension_semantics = [], scalar_prefetch = 0 : i64, scratch_operands = 0 : i64, tpu.core_type = #tpu.core_type<tc>} {
    %c0 = arith.constant 0 : index
    %c0_0 = arith.constant 0 : index
    %0 = vector.load %arg0[%c0, %c0_0] : memref<1x8xf32, #tpu.memory_space<vmem>>, vector<1x8xf32>
    %c0_1 = arith.constant 0 : index
    %c0_2 = arith.constant 0 : index
    %1 = vector.load %arg0[%c0_1, %c0_2] : memref<1x8xf32, #tpu.memory_space<vmem>>, vector<1x8xf32>
    %2 = arith.mulf %0, %1 : vector<1x8xf32>
    %3 = tpu.iota {dimensions = array<i32: 0>} : vector<8x8xi32>
    %4 = tpu.iota {dimensions = array<i32: 1>} : vector<8x8xi32>
    %5 = arith.cmpi eq, %3, %4 : vector<8x8xi32>
    %6 = vector.shape_cast %2 : vector<1x8xf32> to vector<1x8xf32>
    %7 = vector.broadcast %6 : vector<1x8xf32> to vector<8x8xf32>
    %cst = arith.constant 0.000000e+00 : f32
    %8 = vector.broadcast %cst : f32 to vector<8x8xf32>
    %9 = arith.select %5, %7, %8 : vector<8x8xi1>, vector<8x8xf32>
    %c0_3 = arith.constant 0 : index
    %c0_4 = arith.constant 0 : index
    %10 = vector.load %arg1[%c0_3, %c0_4] : memref<8x8xf32, #tpu.memory_space<vmem>>, vector<8x8xf32>
    tpu.vector_store %arg1[%c0_3, %c0_4], %9 {strides = array<i32>} : memref<8x8xf32, #tpu.memory_space<vmem>>, vector<8x8xf32>,
    return
  }
}

</mosaic_0001>

<bundles_post_ra>
// kernel: symmetric_parameter_forward.1
= control target key start
LH: loop header
LB: loop body
LE: loop exit
PB: predicated region body
PF: predicated region fallthrough
CT: control target
= control target key end

     0   :  { %v11_v1 = vlaneseq  ;;  %s82_s0 = inlined_call_operand.vmem [shape: f32[1,8], index: 0, kind: input, shape index: {}]   ;;  %s83_s1 = inlined_call_operand.hbm [shape: f32[8,8], index: 1, kind: output, shape index: {}]  }
   0x1   :  { %v9_v0 = vld [vmem:[%s82_s0] sm:$0x1] }
   0x2   :  { %6 = vsyncpa [#allocation3], 0  ;;  %v10_v2 = vmul.f32 %v9_v0, %v9_v0  ;;  %s65_s8 = smov [#allocation2]   ;;  %s29_s12 = sshll.u32 %s83_s1, 4  ;;  %v12_v3 = vshrl.u32 %v11_v1, 7  ;;  %v14_v4 = vand.u32 127, %v11_v1  ;;  %s30_s12 = int_to_ptr.hbm [resolvable:$true] %s29_s12 }
   0x3   :  { %s27_s9 = sshll.u32 %s65_s8, 4  ;;  %vm20_vm0 = vcmask 64512   ;;  %s28_s9 = int_to_ptr.vmem [resolvable:$true] %s27_s9 }
   0x4   :  { %v17_v5 = vperm.slane %v10_v2, 0  ;;  %vm15_vm1 = vcmp.eq.s32.totalorder %v12_v3, %v14_v4 }
   0x6   :  { %v19_v6 = vsel %vm15_vm1, %v17_v5, 0.0 }
   0x7   :  { %21 = vst.msk [vmem:[#allocation2] sm:$0xff] %vm20_vm0, %v19_v6 }
   0x8   :  { %32 = dma.vmem_to_hbm [thread:$0]  %s28_s9, 128, %s30_s12, [#allocation3]  }
   0x9   :  { %63 = dma.done.wait [#allocation3], 128  }
   0xa   :  { %64 = vsyncadd [#allocation3], 4294967168 }
   0xb   :  { %37 = vsyncpa [#allocation3], 1 }

</bundles_post_ra>
